<compile_context>
chip_gen: v7x
topology: tpu7x:2x2x1
jax: 0.10.0
libtpu: 0.0.40
codegen_flags: <defaults>
</compile_context>

<pallas_src>
import functools

import jax
import jax.numpy as jnp
from jax.experimental import pallas as pl
from jax.experimental.pallas import tpu as pltpu

OUT_PAD = 128  # lane-dense padded output width; sliced back to out_feats in the wrapper


# ----------------------- fused per-step kernel (one grid step = one super-graph) -----------------------
def _fused_kernel(adj_ref, feat_ref, efeat_ref, gather_oh_ref,
                  c1w_ref, c1b_ref, c2w_ref, c2b_ref,
                  w1e_ref, w1s_ref, w1d_ref, b1_ref, w2p_ref, b2p_ref,
                  o_ref):
    bf = jnp.bfloat16
    adj = adj_ref[...]                                                     # (Nb, Nb) bf16, block-diag, pre-normalized

    # ---- GCN layer 1 (+ ReLU); f32 accumulation, bf16 MXU operands ----
    agg = jnp.dot(adj, feat_ref[...], preferred_element_type=jnp.float32)          # (Nb, Fin)
    h = jnp.dot(agg.astype(bf), c1w_ref[...], preferred_element_type=jnp.float32) + c1b_ref[...]
    h = jnp.maximum(h, 0.0)                                                         # (Nb, H) f32

    # ---- GCN layer 2 (h stays on-chip) ----
    agg = jnp.dot(adj, h.astype(bf), preferred_element_type=jnp.float32)
    h = jnp.dot(agg.astype(bf), c2w_ref[...], preferred_element_type=jnp.float32) + c2b_ref[...]  # (Nb, H)

    # ---- edge MLP: fused gather  [src_oh | dst_oh] @ [h@W1_src ; h@W1_dst]  (no lane slicing) ----
    hb = h.astype(bf)
    hw = jnp.concatenate(
        [jnp.dot(hb, w1s_ref[...], preferred_element_type=jnp.float32),
         jnp.dot(hb, w1d_ref[...], preferred_element_type=jnp.float32)], axis=0)    # (2*Nb, H) sublane stack
    z = (jnp.dot(efeat_ref[...], w1e_ref[...], preferred_element_type=jnp.float32)
         + jnp.dot(gather_oh_ref[...], hw.astype(bf), preferred_element_type=jnp.float32)
         + b1_ref[...])
    z = jnp.maximum(z, 0.0)                                                          # (Eb, H) f32
    o_ref[...] = jnp.dot(z.astype(bf), w2p_ref[...], preferred_element_type=jnp.float32) + b2p_ref[...]


# --------------------------------- batched wrapper ---------------------------------
@jax.jit
def _batched_forward(adj, feat, efeat, gather_oh, params):
    s, nb, _ = adj.shape
    eb, fe = efeat.shape[1], efeat.shape[2]
    fin = feat.shape[2]
    h_feats = params["conv1_w"].shape[1]
    out_feats = params["W2"].shape[1]
    bf = jnp.bfloat16

    # ---- operand prep (once per call, outside the kernel): bf16 matmul operands, f32 biases ----
    adj_b, feat_b = adj.astype(bf), feat.astype(bf)
    efeat_b, goh_b = efeat.astype(bf), gather_oh.astype(bf)
    c1w, c2w = params["conv1_w"].astype(bf), params["conv2_w"].astype(bf)
    w1 = params["W1"]
    w1e = w1[:fe].astype(bf)                            # (Fe, H) edge-feature slice
    w1s = w1[fe:fe + h_feats].astype(bf)                # (H, H)  src slice
    w1d = w1[fe + h_feats:].astype(bf)                  # (H, H)  dst slice
    w2p = jnp.zeros((h_feats, OUT_PAD), jnp.float32).at[:, :out_feats].set(params["W2"]).astype(bf)
    b2p = jnp.zeros((1, OUT_PAD), jnp.float32).at[:, :out_feats].set(params["b2"])
    c1b = params["conv1_b"].reshape(1, -1)
    c2b = params["conv2_b"].reshape(1, -1)
    b1 = params["b1"].reshape(1, -1)

    def per_step(shape):   # stacked along leading super-graph axis, one block per grid step
        return pl.BlockSpec((None,) + shape, lambda i, _d=len(shape): (i,) + (0,) * _d)

    def shared(shape):     # same block every grid step -> stays resident in VMEM
        return pl.BlockSpec(shape, lambda i, _d=len(shape): (0,) * _d)

    out = pl.pallas_call(
        _fused_kernel,
        out_shape=jax.ShapeDtypeStruct((s, eb, OUT_PAD), jnp.float32),
        grid=(s,),
        in_specs=[
            per_step((nb, nb)),             # block-diag normalized adjacency
            per_step((nb, fin)),            # node features
            per_step((eb, fe)),             # edge features
            per_step((eb, 2 * nb)),         # [src one-hot | dst one-hot]
            shared((fin, h_feats)),         # conv1 W
            shared((1, h_feats)),           # conv1 b
            shared((h_feats, h_feats)),     # conv2 W
            shared((1, h_feats)),           # conv2 b
            shared((fe, h_feats)),          # W1 edge slice
            shared((h_feats, h_feats)),     # W1 src slice
            shared((h_feats, h_feats)),     # W1 dst slice
            shared((1, h_feats)),           # b1
            shared((h_feats, OUT_PAD)),     # W2 (lane-padded)
            shared((1, OUT_PAD)),           # b2 (lane-padded)
        ],
        out_specs=per_step((eb, OUT_PAD)),
        compiler_params=pltpu.CompilerParams(dimension_semantics=("parallel",)),
    )(adj_b, feat_b, efeat_b, goh_b,
      c1w, c1b, c2w, c2b, w1e, w1s, w1d, b1, w2p, b2p)

    return out  # (S, Eb, OUT_PAD) f32; caller slices back per graph


def _batch_chunk(chunk):
    """Merge equal-sized graphs into one block-diagonal disconnected 'super graph'."""
    g = len(chunk)
    n = chunk[0]["feat"].shape[0]
    nb = g * n
    adj = jnp.zeros((nb, nb), jnp.float32)
    for k, gr in enumerate(chunk):
        adj = adj.at[k * n:(k + 1) * n, k * n:(k + 1) * n].set(gr["adj_norm"])
    feat = jnp.concatenate([gr["feat"] for gr in chunk], axis=0)
    efeat = jnp.concatenate([gr["efeat"] for gr in chunk], axis=0)
    src = jnp.concatenate([gr["src"] + k * n for k, gr in enumerate(chunk)])
    dst = jnp.concatenate([gr["dst"] + k * n for k, gr in enumerate(chunk)])
    gather_oh = jnp.concatenate([jax.nn.one_hot(src, nb, dtype=jnp.float32),
                                 jax.nn.one_hot(dst, nb, dtype=jnp.float32)], axis=1)  # (Eb, 2*Nb)
    return adj, feat, efeat, gather_oh


def feed_forward(graphs, params, graphs_per_step=None):
    """Fused, graph-batched Pallas implementation of FeedForwad.forward."""
    ng = len(graphs)
    if graphs_per_step is None:
        graphs_per_step = ng          # one grid step (best for v5e/v6e); on v7x use ng // 2 for 2 TCs
    assert ng % graphs_per_step == 0, "TODO(synk): ragged chunks need padding to a common size"
    n = graphs[0]["feat"].shape[0]
    e = graphs[0]["efeat"].shape[0]
    for gr in graphs:  # TODO(synk): unequal graphs need padding to a common (N, E) before batching
        assert gr["feat"].shape[0] == n and gr["efeat"].shape[0] == e
    out_feats = params["W2"].shape[1]

    adj_s, feat_s, efeat_s, goh_s = [], [], [], []
    for c0 in range(0, ng, graphs_per_step):
        adj, feat, efeat, goh = _batch_chunk(graphs[c0:c0 + graphs_per_step])
        adj_s.append(adj); feat_s.append(feat); efeat_s.append(efeat); goh_s.append(goh)

    out = _batched_forward(jnp.stack(adj_s), jnp.stack(feat_s),
                           jnp.stack(efeat_s), jnp.stack(goh_s), params)

    rep = {}
    for i in range(ng):
        s_idx, k = divmod(i, graphs_per_step)
        rep[i] = out[s_idx, k * e:(k + 1) * e, :out_feats]
    return rep


# ------------------------------ params / graph construction ------------------------------
def make_params(key, in_feats=2, h_feats=16, edge_feats=7, out_feats=4):
    ks = jax.random.split(key, 8)
    s = 0.1
    return {
        "conv1_w": jax.random.normal(ks[0], (in_feats, h_feats), jnp.float32) * s,
        "conv1_b": jax.random.normal(ks[1], (h_feats,), jnp.float32) * s,
        "conv2_w": jax.random.normal(ks[2], (h_feats, h_feats), jnp.float32) * s,
        "conv2_b": jax.random.normal(ks[3], (h_feats,), jnp.float32) * s,
        "W1": jax.random.normal(ks[4], (h_feats * 2 + edge_feats, h_feats), jnp.float32) * s,
        "b1": jax.random.normal(ks[5], (h_feats,), jnp.float32) * s,
        "W2": jax.random.normal(ks[6], (h_feats, out_feats), jnp.float32) * s,
        "b2": jax.random.normal(ks[7], (out_feats,), jnp.float32) * s,
    }


def make_graph(key, n_nodes=8, n_edges=16, in_feats=2, edge_feats=7):
    ks = jax.random.split(key, 4)
    src = jax.random.randint(ks[0], (n_edges,), 0, n_nodes)
    dst = jax.random.randint(ks[1], (n_edges,), 0, n_nodes)
    feat = jax.random.normal(ks[2], (n_nodes, in_feats), jnp.float32)
    efeat = jax.random.normal(ks[3], (n_edges, edge_feats), jnp.float32)
    adj = jnp.zeros((n_nodes, n_nodes), jnp.float32).at[dst, src].add(1.0)  # Adj[d, s]
    out_deg = jnp.clip(adj.sum(axis=0), 1.0)   # per-source out-degree
    in_deg = jnp.clip(adj.sum(axis=1), 1.0)    # per-destination in-degree
    norm_out = (out_deg ** -0.5).reshape(1, -1)
    norm_in = (in_deg ** -0.5).reshape(-1, 1)
    return {
        "adj": adj,
        "adj_norm": norm_in * adj * norm_out,      # degree norm folded into adjacency
        "feat": feat,
        "efeat": efeat,
        "src": src,
        "dst": dst,
        "norm_out": norm_out.reshape(-1, 1),
        "norm_in": norm_in,
    }


# ------------------------------ plain-JAX reference --------------------------
def feed_forward_ref(graphs, params):
    out = {}
    for i, g in enumerate(graphs):
        def gconv(x, w, b):
            return (g["norm_in"] * (g["adj"] @ (x * g["norm_out"]))) @ w + b
        h = jnp.maximum(gconv(g["feat"], params["conv1_w"], params["conv1_b"]), 0.0)
        h = gconv(h, params["conv2_w"], params["conv2_b"])
        cat = jnp.concatenate([g["efeat"], h[g["src"]], h[g["dst"]]], axis=1)
        z = jnp.maximum(cat @ params["W1"] + params["b1"], 0.0)
        out[i] = z @ params["W2"] + params["b2"]
    return out


if __name__ == "__main__":
    key = jax.random.PRNGKey(0)
    k_params, k_g0, k_g1 = jax.random.split(key, 3)

    params = make_params(k_params)
    graphs = [make_graph(k_g0, n_nodes=8, n_edges=16),
              make_graph(k_g1, n_nodes=8, n_edges=16)]

    edge_rep = feed_forward(graphs, params)
    for v in edge_rep.values():
        jax.block_until_ready(v)

    ref = feed_forward_ref(graphs, params)
    for i in edge_rep:
        assert edge_rep[i].shape == (16, 4)
        # bf16 matmul operands -> slightly looser tolerance than pure-f32
        assert jnp.allclose(edge_rep[i], ref[i], rtol=2e-2, atol=2e-2), f"mismatch on graph {i}"

    print("KERNEL_OK")
</pallas_src>

<mosaic_0001>
module attributes {stable_mosaic.version = 11 : i64} {
  func.func @_fused_kernel(%arg0: i32, %arg1: memref<1x16x16xbf16, #tpu.memory_space<vmem>>, %arg2: memref<1x16x2xbf16, #tpu.memory_space<vmem>>, %arg3: memref<1x32x7xbf16, #tpu.memory_space<vmem>>, %arg4: memref<1x32x32xbf16, #tpu.memory_space<vmem>>, %arg5: memref<2x16xbf16, #tpu.memory_space<vmem>>, %arg6: memref<1x16xf32, #tpu.memory_space<vmem>>, %arg7: memref<16x16xbf16, #tpu.memory_space<vmem>>, %arg8: memref<1x16xf32, #tpu.memory_space<vmem>>, %arg9: memref<7x16xbf16, #tpu.memory_space<vmem>>, %arg10: memref<16x16xbf16, #tpu.memory_space<vmem>>, %arg11: memref<16x16xbf16, #tpu.memory_space<vmem>>, %arg12: memref<1x16xf32, #tpu.memory_space<vmem>>, %arg13: memref<16x128xbf16, #tpu.memory_space<vmem>>, %arg14: memref<1x128xf32, #tpu.memory_space<vmem>>, %arg15: memref<1x32x128xf32, #tpu.memory_space<vmem>>) attributes {dimension_semantics = [#tpu.dimension_semantics<parallel>], iteration_bounds = array<i64: 1>, scalar_prefetch = 0 : i64, scratch_operands = 0 : i64, tpu.core_type = #tpu.core_type<tc>, window_params = [{transform_indices = @transform_0, window_bounds = array<i64: 1, 16, 16>}, {transform_indices = @transform_1, window_bounds = array<i64: 1, 16, 2>}, {transform_indices = @transform_2, window_bounds = array<i64: 1, 32, 7>}, {transform_indices = @transform_3, window_bounds = array<i64: 1, 32, 32>}, {pipeline_mode = #tpu.pipeline_mode<synchronous>, transform_indices = @transform_4, window_bounds = array<i64: 2, 16>}, {pipeline_mode = #tpu.pipeline_mode<synchronous>, transform_indices = @transform_5, window_bounds = array<i64: 1, 16>}, {pipeline_mode = #tpu.pipeline_mode<synchronous>, transform_indices = @transform_6, window_bounds = array<i64: 16, 16>}, {pipeline_mode = #tpu.pipeline_mode<synchronous>, transform_indices = @transform_7, window_bounds = array<i64: 1, 16>}, {pipeline_mode = #tpu.pipeline_mode<synchronous>, transform_indices = @transform_8, window_bounds = array<i64: 7, 16>}, {pipeline_mode = #tpu.pipeline_mode<synchronous>, transform_indices = @transform_9, window_bounds = array<i64: 16, 16>}, {pipeline_mode = #tpu.pipeline_mode<synchronous>, transform_indices = @transform_10, window_bounds = array<i64: 16, 16>}, {pipeline_mode = #tpu.pipeline_mode<synchronous>, transform_indices = @transform_11, window_bounds = array<i64: 1, 16>}, {pipeline_mode = #tpu.pipeline_mode<synchronous>, transform_indices = @transform_12, window_bounds = array<i64: 16, 128>}, {pipeline_mode = #tpu.pipeline_mode<synchronous>, transform_indices = @transform_13, window_bounds = array<i64: 1, 128>}, {transform_indices = @transform_14, window_bounds = array<i64: 1, 32, 128>}]} {
    %c0 = arith.constant 0 : index
    %c0_0 = arith.constant 0 : index
    %c0_1 = arith.constant 0 : index
    %0 = vector.load %arg1[%c0, %c0_0, %c0_1] : memref<1x16x16xbf16, #tpu.memory_space<vmem>>, vector<1x16x16xbf16>
    %1 = vector.shape_cast %0 : vector<1x16x16xbf16> to vector<16x16xbf16>
    %c0_2 = arith.constant 0 : index
    %c0_3 = arith.constant 0 : index
    %c0_4 = arith.constant 0 : index
    %2 = vector.load %arg2[%c0_2, %c0_3, %c0_4] : memref<1x16x2xbf16, #tpu.memory_space<vmem>>, vector<1x16x2xbf16>
    %3 = vector.shape_cast %2 : vector<1x16x2xbf16> to vector<16x2xbf16>
    %cst = arith.constant dense<0.000000e+00> : vector<16x2xf32>
    %4 = tpu.matmul %1, %3, %cst {dimension_numbers = #tpu.dot_dimension_numbers<[1], [0], [0], [1], [0, 0, 1, 1], [], []>} : vector<16x16xbf16>, vector<16x2xbf16>, vector<16x2xf32> -> vector<16x2xf32>
    %5 = arith.truncf %4 : vector<16x2xf32> to vector<16x2xbf16>
    %c0_5 = arith.constant 0 : index
    %c0_6 = arith.constant 0 : index
    %6 = vector.load %arg5[%c0_5, %c0_6] : memref<2x16xbf16, #tpu.memory_space<vmem>>, vector<2x16xbf16>
    %cst_7 = arith.constant dense<0.000000e+00> : vector<16x16xf32>
    %7 = tpu.matmul %5, %6, %cst_7 {dimension_numbers = #tpu.dot_dimension_numbers<[1], [0], [0], [1], [0, 0, 1, 1], [], []>} : vector<16x2xbf16>, vector<2x16xbf16>, vector<16x16xf32> -> vector<16x16xf32>
    %c0_8 = arith.constant 0 : index
    %c0_9 = arith.constant 0 : index
    %8 = vector.load %arg6[%c0_8, %c0_9] : memref<1x16xf32, #tpu.memory_space<vmem>>, vector<1x16xf32>
    %9 = vector.broadcast %8 : vector<1x16xf32> to vector<16x16xf32>
    %10 = arith.addf %7, %9 : vector<16x16xf32>
    %cst_10 = arith.constant 0.000000e+00 : f32
    %11 = vector.broadcast %cst_10 : f32 to vector<16x16xf32>
    %12 = arith.maximumf %10, %11 : vector<16x16xf32>
    %13 = arith.truncf %12 : vector<16x16xf32> to vector<16x16xbf16>
    %cst_11 = arith.constant dense<0.000000e+00> : vector<16x16xf32>
    %14 = tpu.matmul %1, %13, %cst_11 {dimension_numbers = #tpu.dot_dimension_numbers<[1], [0], [0], [1], [0, 0, 1, 1], [], []>} : vector<16x16xbf16>, vector<16x16xbf16>, vector<16x16xf32> -> vector<16x16xf32>
    %15 = arith.truncf %14 : vector<16x16xf32> to vector<16x16xbf16>
    %c0_12 = arith.constant 0 : index
    %c0_13 = arith.constant 0 : index
    %16 = vector.load %arg7[%c0_12, %c0_13] : memref<16x16xbf16, #tpu.memory_space<vmem>>, vector<16x16xbf16>
    %cst_14 = arith.constant dense<0.000000e+00> : vector<16x16xf32>
    %17 = tpu.matmul %15, %16, %cst_14 {dimension_numbers = #tpu.dot_dimension_numbers<[1], [0], [0], [1], [0, 0, 1, 1], [], []>} : vector<16x16xbf16>, vector<16x16xbf16>, vector<16x16xf32> -> vector<16x16xf32>
    %c0_15 = arith.constant 0 : index
    %c0_16 = arith.constant 0 : index
    %18 = vector.load %arg8[%c0_15, %c0_16] : memref<1x16xf32, #tpu.memory_space<vmem>>, vector<1x16xf32>
    %19 = vector.broadcast %18 : vector<1x16xf32> to vector<16x16xf32>
    %20 = arith.addf %17, %19 : vector<16x16xf32>
    %21 = arith.truncf %20 : vector<16x16xf32> to vector<16x16xbf16>
    %c0_17 = arith.constant 0 : index
    %c0_18 = arith.constant 0 : index
    %22 = vector.load %arg10[%c0_17, %c0_18] : memref<16x16xbf16, #tpu.memory_space<vmem>>, vector<16x16xbf16>
    %cst_19 = arith.constant dense<0.000000e+00> : vector<16x16xf32>
    %23 = tpu.matmul %21, %22, %cst_19 {dimension_numbers = #tpu.dot_dimension_numbers<[1], [0], [0], [1], [0, 0, 1, 1], [], []>} : vector<16x16xbf16>, vector<16x16xbf16>, vector<16x16xf32> -> vector<16x16xf32>
    %c0_20 = arith.constant 0 : index
    %c0_21 = arith.constant 0 : index
    %24 = vector.load %arg11[%c0_20, %c0_21] : memref<16x16xbf16, #tpu.memory_space<vmem>>, vector<16x16xbf16>
    %cst_22 = arith.constant dense<0.000000e+00> : vector<16x16xf32>
    %25 = tpu.matmul %21, %24, %cst_22 {dimension_numbers = #tpu.dot_dimension_numbers<[1], [0], [0], [1], [0, 0, 1, 1], [], []>} : vector<16x16xbf16>, vector<16x16xbf16>, vector<16x16xf32> -> vector<16x16xf32>
    %26 = tpu.concatenate %23, %25 in 0 : vector<16x16xf32>, vector<16x16xf32> -> vector<32x16xf32>
    %c0_23 = arith.constant 0 : index
    %c0_24 = arith.constant 0 : index
    %c0_25 = arith.constant 0 : index
    %27 = vector.load %arg3[%c0_23, %c0_24, %c0_25] : memref<1x32x7xbf16, #tpu.memory_space<vmem>>, vector<1x32x7xbf16>
    %28 = vector.shape_cast %27 : vector<1x32x7xbf16> to vector<32x7xbf16>
    %c0_26 = arith.constant 0 : index
    %c0_27 = arith.constant 0 : index
    %29 = vector.load %arg9[%c0_26, %c0_27] : memref<7x16xbf16, #tpu.memory_space<vmem>>, vector<7x16xbf16>
    %cst_28 = arith.constant dense<0.000000e+00> : vector<32x16xf32>
    %30 = tpu.matmul %28, %29, %cst_28 {dimension_numbers = #tpu.dot_dimension_numbers<[1], [0], [0], [1], [0, 0, 1, 1], [], []>} : vector<32x7xbf16>, vector<7x16xbf16>, vector<32x16xf32> -> vector<32x16xf32>
    %c0_29 = arith.constant 0 : index
    %c0_30 = arith.constant 0 : index
    %c0_31 = arith.constant 0 : index
    %31 = vector.load %arg4[%c0_29, %c0_30, %c0_31] : memref<1x32x32xbf16, #tpu.memory_space<vmem>>, vector<1x32x32xbf16>
    %32 = vector.shape_cast %31 : vector<1x32x32xbf16> to vector<32x32xbf16>
    %33 = arith.truncf %26 : vector<32x16xf32> to vector<32x16xbf16>
    %cst_32 = arith.constant dense<0.000000e+00> : vector<32x16xf32>
    %34 = tpu.matmul %32, %33, %cst_32 {dimension_numbers = #tpu.dot_dimension_numbers<[1], [0], [0], [1], [0, 0, 1, 1], [], []>} : vector<32x32xbf16>, vector<32x16xbf16>, vector<32x16xf32> -> vector<32x16xf32>
    %35 = arith.addf %30, %34 : vector<32x16xf32>
    %c0_33 = arith.constant 0 : index
    %c0_34 = arith.constant 0 : index
    %36 = vector.load %arg12[%c0_33, %c0_34] : memref<1x16xf32, #tpu.memory_space<vmem>>, vector<1x16xf32>
    %37 = vector.broadcast %36 : vector<1x16xf32> to vector<32x16xf32>
    %38 = arith.addf %35, %37 : vector<32x16xf32>
    %cst_35 = arith.constant 0.000000e+00 : f32
    %39 = vector.broadcast %cst_35 : f32 to vector<32x16xf32>
    %40 = arith.maximumf %38, %39 : vector<32x16xf32>
    %41 = arith.truncf %40 : vector<32x16xf32> to vector<32x16xbf16>
    %c0_36 = arith.constant 0 : index
    %c0_37 = arith.constant 0 : index
    %42 = vector.load %arg13[%c0_36, %c0_37] : memref<16x128xbf16, #tpu.memory_space<vmem>>, vector<16x128xbf16>
    %cst_38 = arith.constant dense<0.000000e+00> : vector<32x128xf32>
    %43 = tpu.matmul %41, %42, %cst_38 {dimension_numbers = #tpu.dot_dimension_numbers<[1], [0], [0], [1], [0, 0, 1, 1], [], []>} : vector<32x16xbf16>, vector<16x128xbf16>, vector<32x128xf32> -> vector<32x128xf32>
    %c0_39 = arith.constant 0 : index
    %c0_40 = arith.constant 0 : index
    %44 = vector.load %arg14[%c0_39, %c0_40] : memref<1x128xf32, #tpu.memory_space<vmem>>, vector<1x128xf32>
    %45 = vector.broadcast %44 : vector<1x128xf32> to vector<32x128xf32>
    %46 = arith.addf %43, %45 : vector<32x128xf32>
    %c0_41 = arith.constant 0 : index
    %c0_42 = arith.constant 0 : index
    %c0_43 = arith.constant 0 : index
    %47 = vector.load %arg15[%c0_41, %c0_42, %c0_43] : memref<1x32x128xf32, #tpu.memory_space<vmem>>, vector<1x32x128xf32>
    %48 = vector.shape_cast %47 : vector<1x32x128xf32> to vector<32x128xf32>
    %49 = vector.shape_cast %46 : vector<32x128xf32> to vector<1x32x128xf32>
    tpu.vector_store %arg15[%c0_41, %c0_42, %c0_43], %49 {strides = array<i32>} : memref<1x32x128xf32, #tpu.memory_space<vmem>>, vector<1x32x128xf32>,
    return
  }
  func.func @transform_0(%arg0: i32) -> (i32, i32, i32) {
    %c0_i32 = arith.constant 0 : i32
    %c0_i32_0 = arith.constant 0 : i32
    %c0_i32_1 = arith.constant 0 : i32
    return %arg0, %c0_i32, %c0_i32_0 : i32, i32, i32
  }
  func.func @transform_1(%arg0: i32) -> (i32, i32, i32) {
    %c0_i32 = arith.constant 0 : i32
    %c0_i32_0 = arith.constant 0 : i32
    %c0_i32_1 = arith.constant 0 : i32
    return %arg0, %c0_i32, %c0_i32_0 : i32, i32, i32
  }
  func.func @transform_2(%arg0: i32) -> (i32, i32, i32) {
    %c0_i32 = arith.constant 0 : i32
    %c0_i32_0 = arith.constant 0 : i32
    %c0_i32_1 = arith.constant 0 : i32
    return %arg0, %c0_i32, %c0_i32_0 : i32, i32, i32
  }
  func.func @transform_3(%arg0: i32) -> (i32, i32, i32) {
    %c0_i32 = arith.constant 0 : i32
    %c0_i32_0 = arith.constant 0 : i32
    %c0_i32_1 = arith.constant 0 : i32
    return %arg0, %c0_i32, %c0_i32_0 : i32, i32, i32
  }
  func.func @transform_4(%arg0: i32) -> (i32, i32) {
    %c0_i32 = arith.constant 0 : i32
    %c0_i32_0 = arith.constant 0 : i32
    %c0_i32_1 = arith.constant 0 : i32
    return %c0_i32, %c0_i32_0 : i32, i32
  }
  func.func @transform_5(%arg0: i32) -> (i32, i32) {
    %c0_i32 = arith.constant 0 : i32
    %c0_i32_0 = arith.constant 0 : i32
    %c0_i32_1 = arith.constant 0 : i32
    return %c0_i32, %c0_i32_0 : i32, i32
  }
  func.func @transform_6(%arg0: i32) -> (i32, i32) {
    %c0_i32 = arith.constant 0 : i32
    %c0_i32_0 = arith.constant 0 : i32
    %c0_i32_1 = arith.constant 0 : i32
    return %c0_i32, %c0_i32_0 : i32, i32
  }
  func.func @transform_7(%arg0: i32) -> (i32, i32) {
    %c0_i32 = arith.constant 0 : i32
    %c0_i32_0 = arith.constant 0 : i32
    %c0_i32_1 = arith.constant 0 : i32
    return %c0_i32, %c0_i32_0 : i32, i32
  }
  func.func @transform_8(%arg0: i32) -> (i32, i32) {
    %c0_i32 = arith.constant 0 : i32
    %c0_i32_0 = arith.constant 0 : i32
    %c0_i32_1 = arith.constant 0 : i32
    return %c0_i32, %c0_i32_0 : i32, i32
  }
  func.func @transform_9(%arg0: i32) -> (i32, i32) {
    %c0_i32 = arith.constant 0 : i32
    %c0_i32_0 = arith.constant 0 : i32
    %c0_i32_1 = arith.constant 0 : i32
    return %c0_i32, %c0_i32_0 : i32, i32
  }
  func.func @transform_10(%arg0: i32) -> (i32, i32) {
    %c0_i32 = arith.constant 0 : i32
    %c0_i32_0 = arith.constant 0 : i32
    %c0_i32_1 = arith.constant 0 : i32
    return %c0_i32, %c0_i32_0 : i32, i32
  }
  func.func @transform_11(%arg0: i32) -> (i32, i32) {
    %c0_i32 = arith.constant 0 : i32
    %c0_i32_0 = arith.constant 0 : i32
    %c0_i32_1 = arith.constant 0 : i32
    return %c0_i32, %c0_i32_0 : i32, i32
  }
  func.func @transform_12(%arg0: i32) -> (i32, i32) {
    %c0_i32 = arith.constant 0 : i32
    %c0_i32_0 = arith.constant 0 : i32
    %c0_i32_1 = arith.constant 0 : i32
    return %c0_i32, %c0_i32_0 : i32, i32
  }
  func.func @transform_13(%arg0: i32) -> (i32, i32) {
    %c0_i32 = arith.constant 0 : i32
    %c0_i32_0 = arith.constant 0 : i32
    %c0_i32_1 = arith.constant 0 : i32
    return %c0_i32, %c0_i32_0 : i32, i32
  }
  func.func @transform_14(%arg0: i32) -> (i32, i32, i32) {
    %c0_i32 = arith.constant 0 : i32
    %c0_i32_0 = arith.constant 0 : i32
    %c0_i32_1 = arith.constant 0 : i32
    return %arg0, %c0_i32, %c0_i32_0 : i32, i32, i32
  }
}

</mosaic_0001>

<bundles_post_ra>
// kernel: _batched_forward.1
= control target key start
LH: loop header
LB: loop body
LE: loop exit
PB: predicated region body
PF: predicated region fallthrough
CT: control target
= control target key end

     0   :  { %v778_v1 = vmov 0.0   ;;  %vm779_vm0 = vmmov 0   ;;  %vm64_vm1 = vcmask 130048   ;;  %s934_s0 = inlined_call_operand.vmem [shape: bf16[1,16,16], index: 0, kind: input, shape index: {}]   ;;  %s935_s1 = inlined_call_operand.vmem [shape: bf16[1,16,2], index: 1, kind: input, shape index: {}]   ;;  %s936_s2 = inlined_call_operand.vmem [shape: bf16[1,32,7], index: 2, kind: input, shape index: {}]   ;;  %s937_s3 = inlined_call_operand.vmem [shape: bf16[1,32,32], index: 3, kind: input, shape index: {}]   ;;  %s938_s4 = inlined_call_operand.vmem [shape: bf16[2,16], index: 4, kind: input, shape index: {}]   ;;  %s939_s5 = inlined_call_operand.vmem [shape: f32[1,16], index: 5, kind: input, shape index: {}]   ;;  %s940_s6 = inlined_call_operand.vmem [shape: bf16[16,16], index: 6, kind: input, shape index: {}]   ;;  %s941_s7 = inlined_call_operand.vmem [shape: f32[1,16], index: 7, kind: input, shape index: {}]   ;;  %s942_s8 = inlined_call_operand.vmem [shape: bf16[7,16], index: 8, kind: input, shape index: {}]   ;;  %s943_s9 = inlined_call_operand.vmem [shape: bf16[16,16], index: 9, kind: input, shape index: {}]   ;;  %s944_s10 = inlined_call_operand.vmem [shape: bf16[16,16], index: 10, kind: input, shape index: {}]   ;;  %s945_s11 = inlined_call_operand.vmem [shape: f32[1,16], index: 11, kind: input, shape index: {}]   ;;  %s946_s12 = inlined_call_operand.vmem [shape: bf16[16,128], index: 12, kind: input, shape index: {}]   ;;  %s947_s13 = inlined_call_operand.vmem [shape: f32[1,128], index: 13, kind: input, shape index: {}]   ;;  %s948_s14 = inlined_call_operand.hbm [shape: f32[1,32,128], index: 14, kind: output, shape index: {}]  }
   0x1   :  { %v744_v0 = vld [vmem:[%s935_s1] sm:$0xff]   ;;  %678 = vmatprep.subr.bf16.mxu0 %v778_v1  ;;  %684 = vmatprep.subr.bf16.mxu1 %v778_v1 }
   0x2   :  { %v745_v2 = vld [vmem:[%s934_s0] sm:$0xff]   ;;  %679 = vmatpush3.bf16.msra.mxu0 %v744_v0  ;;  %680 = vmatprep.mubr.msk.bf16.mxu0 %vm779_vm0, %v778_v1 }
   0x3   :  { %686 = vmatprep.mubr.msk.bf16.mxu1 %vm779_vm0, %v778_v1  ;;  %690 = vmatprep.subr.bf16.mxu0 %v778_v1 }
   0x5   :  { %681 = vmatmul.mubr.msk.bf16.vlgmr.msra.gmra.mrb[0].mxu0 %vm64_vm1, %v745_v2 }
   0x6   :  { %692 = vmatprep.mubr.msk.bf16.mxu0 %vm779_vm0, %v778_v1 }
   0x7   :  { %19 = vsyncpa [#allocation3], 0  ;;  %v110_v3 = vld [vmem:[%s938_s4] sm:$0x1]  ;;  %vm122_vm2 = vcmask 1040384   ;;  %vm118_vm3 = vcmask 15360  }
   0x8   :  { %v124_v4 = vsel %vm122_vm2, %v110_v3, 0  ;;  %v633_v10 = vld [vmem:[%s939_s5] ss:$0 sm:$0xff]  ;;  %vm394_vm4 = vcmask 261120   ;;  %vm467_vm5 = vcmask 1042432   ;;  %vm468_vm6 = vcmask 1043456  }
   0x9   :  { %685 = vmatpush3.bf16.msra.mxu1 %v124_v4  ;;  %v746_v20 = vld [vmem:[%s940_s6] sm:$0xff]   ;;  %v780_v41 = vmov 65535   ;;  %v750_v52 = vld [vmem:[%s937_s3 + $0x8] sm:$0xff]   ;;  %vm460_vm7 = vcmask 56320  }
   0xa   :  { %696 = vmatprep.subr.bf16.mxu1 %v778_v1  ;;  %v747_v26 = vld [vmem:[%s943_s9] sm:$0xff]   ;;  %v469_v42 = vsel %vm467_vm5, 4294967295, %v780_v41  ;;  %v752_v54 = vld [vmem:[%s936_s2 + $0x8] sm:$0xff]  }
   0xb   :  { %v748_v27 = vld [vmem:[%s944_s10] sm:$0xff]   ;;  %v470_v50 = vsel %vm468_vm6, %v469_v42, 0 }
   0xc   :  { %v636_v28 = vld [vmem:[%s941_s7] ss:$0 sm:$0xff] }
   0xd   :  { %v749_v36 = vld [vmem:[%s937_s3] sm:$0xff]  }
   0xe   :  { %v377_v49 = vld [vmem:[%s942_s8] sm:$0xf] }
   0xf   :  { %v472_v51 = vand.u32 %v470_v50, %v377_v49  ;;  %v751_v53 = vld [vmem:[%s936_s2] sm:$0xff]  }
  0x10   :  { %v753_v55 = vld [vmem:[%s946_s12] sm:$0xff]   ;;  %s781_s12 = smov [#allocation2]  }
  0x11   :  { %v651_v56 = vld [vmem:[%s945_s11] ss:$0 sm:$0xff]  ;;  %s619_s1 = sshll.u32 %s781_s12, 4  ;;  %s620_s1 = int_to_ptr.vmem [resolvable:$true] %s619_s1 }
  0x12   :  { %s754_s17 = scalar_lea.vmem %s620_s1, 512  ;;  %p759_p1 = scmp.lt.s32.totalorder %s620_s1, %s620_s1 }
  0x13   :  { %p755_p0 = scmp.ne.s32.totalorder %s620_s1, %s754_s17  ;;  %p760_p2 = scmp.lt.s32.totalorder %s754_s17, %s754_s17 }
  0x15   :  { %p761_p3 = por %p760_p2, %p759_p1 }
  0x17   :  { %p762_p4 = pnand %p761_p3, %p755_p0 }
  0xd8   :  { %v102_v5 = vpop.f32.mrb[0].mxu0 }
  0xd9   :  { %v682_v6 = vpop.f32.mrb[1].mxu0 }
  0xda   :  { %v105_v7 = vpop.f32.mrb[2].mxu0 }
  0xdb   :  { %v109_v8 = vpack.c.bf16 %v105_v7, %v102_v5  ;;  %v683_v9 = vpop.f32.mrb[3].mxu0  ;;  %v652_v7 = vld [vmem:[%s947_s13] ss:$0 sm:$0xff] }
  0xdd   :  { %687 = vmatmul.mubr.msk.bf16.vlgmr.msra.gmra.mrb[0].mxu1 %vm118_vm3, %v109_v8 }
  0xde   :  { %698 = vmatprep.mubr.msk.bf16.mxu1 %vm779_vm0, %v778_v1  ;;  %697 = vmatpush3.bf16.msra.mxu1 %v746_v20 }
  0xdf   :  { %708 = vmatprep.subr.bf16.mxu1 %v778_v1 }
 0x1b0   :  { %v160_v11 = vpop.f32.mrb[0].mxu1 }
 0x1b1   :  { %v161_v12 = vadd.f32 %v633_v10, %v160_v11  ;;  %v688_v13 = vpop.f32.mrb[1].mxu1 }
 0x1b2   :  { %v163_v14 = vpop.f32.mrb[2].mxu1 }
 0x1b3   :  { %v164_v15 = vadd.f32 %v633_v10, %v163_v14  ;;  %v689_v16 = vpop.f32.mrb[3].mxu1  ;;  %v167_v17 = vmax.f32 %v161_v12, 0.0 }
 0x1b5   :  { %v168_v18 = vmax.f32 %v164_v15, 0.0 }
 0x1b7   :  { %v169_v19 = vpack.c.bf16 %v168_v18, %v167_v17 }
 0x1b9   :  { %691 = vmatpush3.bf16.msra.mxu0 %v169_v19 }
 0x1ba   :  { %702 = vmatprep.subr.bf16.mxu0 %v778_v1 }
 0x1bc   :  { %693 = vmatmul.mubr.msk.bf16.vlgmr.msra.gmra.mrb[4].mxu0 %vm64_vm1, %v745_v2 }
 0x1bd   :  { %704 = vmatprep.mubr.msk.bf16.mxu0 %vm779_vm0, %v778_v1  ;;  %703 = vmatpush3.bf16.msra.mxu0 %v747_v26 }
 0x28f   :  { %v204_v21 = vpop.f32.mrb[4].mxu0 }
 0x290   :  { %v694_v22 = vpop.f32.mrb[5].mxu0 }
 0x291   :  { %v207_v23 = vpop.f32.mrb[6].mxu0 }
 0x292   :  { %v211_v24 = vpack.c.bf16 %v207_v23, %v204_v21  ;;  %v695_v25 = vpop.f32.mrb[7].mxu0 }
 0x294   :  { %699 = vmatmul.mubr.msk.bf16.vlgmr.msra.gmra.mrb[4].mxu1 %vm64_vm1, %v211_v24 }
 0x295   :  { %710 = vmatprep.mubr.msk.bf16.mxu1 %vm779_vm0, %v778_v1  ;;  %709 = vmatpush3.bf16.msra.mxu1 %v748_v27 }
 0x296   :  { %728 = vmatprep.subr.bf16.mxu1 %v753_v55 }
 0x367   :  { %v264_v29 = vpop.f32.mrb[4].mxu1 }
 0x368   :  { %v700_v30 = vpop.f32.mrb[5].mxu1  ;;  %v265_v32 = vadd.f32 %v636_v28, %v264_v29 }
 0x369   :  { %v267_v31 = vpop.f32.mrb[6].mxu1 }
 0x36a   :  { %v268_v33 = vadd.f32 %v636_v28, %v267_v31  ;;  %v701_v34 = vpop.f32.mrb[7].mxu1 }
 0x36c   :  { %v271_v35 = vpack.c.bf16 %v268_v33, %v265_v32 }
 0x36e   :  { %705 = vmatmul.mubr.msk.bf16.vlgmr.msra.gmra.mrb[8].mxu0 %vm64_vm1, %v271_v35  ;;  %711 = vmatmul.mubr.msk.bf16.vlgmr.msra.gmra.mrb[8].mxu1 %vm64_vm1, %v271_v35 }
 0x36f   :  { %718 = vmatprep.mubr.msk.bf16.mxu0 %vm394_vm4, %v749_v36  ;;  %729 = vmatpush3.bf16.msra.mxu1 %v753_v55 }
 0x441   :  { %v317_v37 = vpop.f32.mrb[8].mxu0  ;;  %v366_v38 = vpop.f32.mrb[8].mxu1 }
 0x442   :  { %v706_v39 = vpop.f32.mrb[9].mxu0  ;;  %v712_v40 = vpop.f32.mrb[9].mxu1 }
 0x443   :  { %v320_v43 = vpop.f32.mrb[10].mxu0  ;;  %v369_v44 = vpop.f32.mrb[10].mxu1 }
 0x444   :  { %v382_v45 = vpack.c.bf16 %v320_v43, %v317_v37  ;;  %v383_v46 = vpack.c.bf16 %v369_v44, %v366_v38  ;;  %v707_v47 = vpop.f32.mrb[11].mxu0  ;;  %v713_v48 = vpop.f32.mrb[11].mxu1 }
 0x446   :  { %714 = vmatprep.subr.bf16.mxu0 %v382_v45 }
 0x447   :  { %715 = vmatpush3.bf16.msra.mxu0 %v382_v45 }
 0x448   :  { %716 = vmatprep.subr.bf16.mxu0 %v383_v46 }
 0x44b   :  { %717 = vmatpush3.bf16.msra.mxu0 %v383_v46 }
 0x44c   :  { %722 = vmatprep.subr.bf16.mxu0 %v472_v51 }
 0x44e   :  { %719 = vmatmul.mubr.msk.bf16.vlgmr.msra.gmra.mrb[12].mxu0 %vm394_vm4, %v750_v52 }
 0x44f   :  { %723 = vmatpush3.bf16.msra.mxu0 %v472_v51  ;;  %724 = vmatprep.mubr.msk.bf16.mxu0 %vm460_vm7, %v751_v53 }
 0x45a   :  { %725 = vmatmul.mubr.msk.bf16.vlgmr.msra.gmra.mrb[12].mxu0 %vm460_vm7, %v752_v54 }
 0x52d   :  { %v726_v57 = vpop.f32.mrb[12].mxu0 }
 0x52e   :  { %v532_v58 = vadd.f32 %v726_v57, %v651_v56  ;;  %v508_v59 = vpop.f32.mrb[13].mxu0 }
 0x52f   :  { %v530_v60 = vadd.f32 %v651_v56, %v508_v59  ;;  %v727_v61 = vpop.f32.mrb[14].mxu0 }
 0x530   :  { %v533_v62 = vadd.f32 %v727_v61, %v651_v56  ;;  %v511_v63 = vpop.f32.mrb[15].mxu0  ;;  %v536_v1 = vmax.f32 %v532_v58, 0.0 }
 0x531   :  { %v531_v0 = vadd.f32 %v651_v56, %v511_v63  ;;  %v534_v3 = vmax.f32 %v530_v60, 0.0 }
 0x532   :  { %v537_v2 = vmax.f32 %v533_v62, 0.0 }
 0x533   :  { %v535_v4 = vmax.f32 %v531_v0, 0.0 }
 0x534   :  { %v539_v5 = vpack.c.bf16 %v537_v2, %v536_v1 }
 0x535   :  { %v538_v6 = vpack.c.bf16 %v535_v4, %v534_v3 }
 0x537   :  { %730 = vmatprep.mubr.msk.bf16.mxu1 %vm64_vm1, %v538_v6 }
 0x538   :  { %731 = vmatmul.mubr.msk.bf16.vlgmr.msra.gmra.mrb[12].mxu1 %vm64_vm1, %v539_v5 }
 0x60b   :  { %v732_v8 = vpop.f32.mrb[12].mxu1 }
 0x60c   :  { %v604_v9 = vadd.f32 %v732_v8, %v652_v7  ;;  %v595_v10 = vpop.f32.mrb[13].mxu1 }
 0x60d   :  { %v596_v11 = vadd.f32 %v652_v7, %v595_v10  ;;  %v733_v12 = vpop.f32.mrb[14].mxu1 }
 0x60e   :  { %612 = vst [vmem:[#allocation2 + $0x10] sm:$0xff] %v604_v9  ;;  %v607_v13 = vadd.f32 %v733_v12, %v652_v7  ;;  %v598_v14 = vpop.f32.mrb[15].mxu1 }
 0x60f   :  { %610 = vst [vmem:[#allocation2] sm:$0xff] %v596_v11  ;;  %v599_v15 = vadd.f32 %v652_v7, %v598_v14 }
 0x610   :  { %613 = vst [vmem:[#allocation2 + $0x18] sm:$0xff] %v607_v13 }
 0x611   :  { %611 = vst [vmem:[#allocation2 + $0x8] sm:$0xff] %v599_v15 }
 0x612   :  { %765 = shalt.err (!%p762_p4)
}
 0x613   :  { %s766_s18 = scalar_lea.hbm %s948_s14, 512 }
 0x614   :  { %p767_p5 = scmp.ne.s32.totalorder %s948_s14, %s766_s18  ;;  %p770_p6 = scmp.lt.u32.totalorder %s766_s18, %s948_s14 }
 0x616   :  { %p772_p7 = pnand %p770_p6, %p767_p5 }
 0x618   :  { %775 = shalt.err (!%p772_p7)
}
 0x619   :  { %s782_s21 = smov 128   ;;  %s783_s22 = smov 8  }
 0x61a   :  { %625 = dma.vmem_to_hbm [thread:$0]  %s620_s1, 512, %s948_s14, [#allocation3], %s782_s21, %s782_s21, %s783_s22  }
 0x61b   :  { %776 = dma.done.wait [#allocation3], 512  }
 0x61c   :  { %777 = vsyncadd [#allocation3], 4294966784 }
 0x61d   :  { %629 = vsyncpa [#allocation3], 1 }

</bundles_post_ra>
